<compile_context>
chip_gen: v5e
topology: v5e:2x2
jax: 0.10.0
libtpu: 0.0.40
codegen_flags: <defaults>
</compile_context>

<pallas_src>
import functools

import jax
import jax.numpy as jnp
from jax.experimental import pallas as pl
from jax.experimental.pallas import tpu as pltpu

_NORM_EPS = 1e-12  # torch.nn.functional.normalize default eps
_NEG_MASK_VALUE = -1e30


def _round_up(x, m):
    return ((x + m - 1) // m) * m


def _ntxent_mined_kernel(pos0_ref, pos1_ref, neg0_ref, neg1_ref,
                         loss0_ref, loss1_ref,
                         m0, l0, m1, l1, diag_sc,
                         *, inv_temperature, tile_n, num_valid_neg,
                         mask_neg, mxu_dtype):
    """Grid = (row tiles [parallel], negative tiles [arbitrary])."""
    j = pl.program_id(1)
    nj = pl.num_programs(1)

    def l2_normalize(x, scale=1.0):
        # x * rsqrt(max(sum(x^2), eps^2)) == x / max(||x||, eps)  (torch semantics)
        ssq = jnp.sum(x * x, axis=1, keepdims=True)
        inv = jax.lax.rsqrt(jnp.maximum(ssq, _NORM_EPS * _NORM_EPS))
        return x * (inv * scale)

    # Normalize in f32. Fold 1/T into pos0 (covers logits_00 + diagonal) and
    # into neg1 (covers logits_11) -> no per-logit scaling of (B,B) blocks.
    p0 = l2_normalize(pos0_ref[...].astype(jnp.float32), inv_temperature)
    p1 = l2_normalize(pos1_ref[...].astype(jnp.float32))
    n0 = l2_normalize(neg0_ref[...].astype(jnp.float32))
    n1 = l2_normalize(neg1_ref[...].astype(jnp.float32), inv_temperature)

    @pl.when(j == 0)
    def _():
        # Positive logit (label column) = diag(<pos0, pos1>)/T; it seeds the
        # running logsumexp: m = diag, l = exp(diag - diag) = 1.
        d = jnp.sum(p0 * p1, axis=1, keepdims=True)
        diag_sc[...] = d
        m0[...] = d
        m1[...] = d
        l0[...] = jnp.ones_like(d)
        l1[...] = jnp.ones_like(d)

    # (M, C) x (N, C) contraction on the feature axis -> no transpose materialized.
    dn = (((1,), (1,)), ((), ()))
    s00 = jax.lax.dot_general(p0.astype(mxu_dtype), n0.astype(mxu_dtype),
                              dimension_numbers=dn,
                              preferred_element_type=jnp.float32)
    s11 = jax.lax.dot_general(p1.astype(mxu_dtype), n1.astype(mxu_dtype),
                              dimension_numbers=dn,
                              preferred_element_type=jnp.float32)

    if mask_neg:
        col = j * tile_n + jax.lax.broadcasted_iota(jnp.int32, s00.shape, 1)
        valid = col < num_valid_neg
        s00 = jnp.where(valid, s00, _NEG_MASK_VALUE)
        s11 = jnp.where(valid, s11, _NEG_MASK_VALUE)

    def online_update(m_ref, l_ref, s):
        m_prev = m_ref[...]
        m_new = jnp.maximum(m_prev, jnp.max(s, axis=1, keepdims=True))
        alpha = jnp.exp(m_prev - m_new)
        l_ref[...] = l_ref[...] * alpha + jnp.sum(
            jnp.exp(s - m_new), axis=1, keepdims=True)
        m_ref[...] = m_new

    online_update(m0, l0, s00)
    online_update(m1, l1, s11)

    @pl.when(j == nj - 1)
    def _():
        d = diag_sc[...]
        # per-row CE = logsumexp(row) - positive_logit
        loss0_ref[...] = m0[...] + jnp.log(l0[...]) - d
        loss1_ref[...] = m1[...] + jnp.log(l1[...]) - d


def ntxent_negative_mined_loss(out, temperature: float = 0.1,
                               tile_b: int | None = None,
                               tile_n: int | None = None):
    """JAX wrapper mirroring NTXentNegativeMinedLoss.forward.

    Args:
      out: dict with 'positive' -> (pos0, pos1) and 'negative' -> (neg0, neg1),
           each of shape (B, C).
    Returns:
      scalar float32 loss.
    """
    assert 'positive' in out, '`positive` key needs to be specified'
    assert 'negative' in out, '`negative` key needs to be specified'
    if abs(temperature) < 1e-8:
        raise ValueError(
            'Illegal temperature: abs({}) < 1e-8'.format(temperature))

    pos0, pos1 = out['positive']
    neg0, neg1 = out['negative']
    B, C = pos0.shape

    # bf16 inputs stay bf16 for the MXU; everything else computes in f32.
    mxu_dtype = jnp.bfloat16 if pos0.dtype == jnp.bfloat16 else jnp.float32

    # Pad features to a lane multiple (zero feature padding changes neither the
    # L2 norms nor the dot products).
    Cp = _round_up(C, 128)
    if Cp != C:
        fpad = [(0, 0), (0, Cp - C)]
        pos0, pos1 = jnp.pad(pos0, fpad), jnp.pad(pos1, fpad)
        neg0, neg1 = jnp.pad(neg0, fpad), jnp.pad(neg1, fpad)

    # Tile sizes: multiples of 8 sublanes, default <= 128 rows per tile.
    tile_b = _round_up(min(tile_b or 128, _round_up(B, 8)), 8)
    tile_n = _round_up(min(tile_n or 128, _round_up(B, 8)), 8)

    Bq = _round_up(B, tile_b)   # padded query rows (discarded in the mean)
    Bn = _round_up(B, tile_n)   # padded negative rows (masked in-kernel)
    if Bq != B:
        pos0 = jnp.pad(pos0, [(0, Bq - B), (0, 0)])
        pos1 = jnp.pad(pos1, [(0, Bq - B), (0, 0)])
    if Bn != B:
        neg0 = jnp.pad(neg0, [(0, Bn - B), (0, 0)])
        neg1 = jnp.pad(neg1, [(0, Bn - B), (0, 0)])

    grid = (Bq // tile_b, Bn // tile_n)

    kernel = functools.partial(
        _ntxent_mined_kernel,
        inv_temperature=1.0 / temperature,
        tile_n=tile_n,
        num_valid_neg=B,
        mask_neg=(Bn != B),
        mxu_dtype=mxu_dtype,
    )

    pos_spec = pl.BlockSpec((tile_b, Cp), lambda i, j: (i, 0))
    neg_spec = pl.BlockSpec((tile_n, Cp), lambda i, j: (j, 0))
    out_spec = pl.BlockSpec((tile_b, 1), lambda i, j: (i, 0))

    loss0, loss1 = pl.pallas_call(
        kernel,
        out_shape=(jax.ShapeDtypeStruct((Bq, 1), jnp.float32),
                   jax.ShapeDtypeStruct((Bq, 1), jnp.float32)),
        grid_spec=pltpu.PrefetchScalarGridSpec(
            num_scalar_prefetch=0,
            grid=grid,
            in_specs=[pos_spec, pos_spec, neg_spec, neg_spec],
            out_specs=[out_spec, out_spec],
            scratch_shapes=[pltpu.VMEM((tile_b, 1), jnp.float32)] * 5,
        ),
        compiler_params=pltpu.CompilerParams(
            dimension_semantics=("parallel", "arbitrary"),
            vmem_limit_bytes=48 * 1024 * 1024,
        ),
    )(pos0, pos1, neg0, neg1)

    # Mean CE over the 2*B real rows; padded query rows are simply dropped.
    return (jnp.sum(loss0[:B, 0]) + jnp.sum(loss1[:B, 0])) / (2.0 * B)


def _reference_loss(out, temperature=0.1):
    """Pure-JAX reference (mirrors the PyTorch forward) for validation."""
    pos0, pos1 = out['positive']
    neg0, neg1 = out['negative']

    def norm(x):
        n = jnp.linalg.norm(x, axis=1, keepdims=True)
        return x / jnp.maximum(n, _NORM_EPS)

    p0, p1, n0, n1 = norm(pos0), norm(pos1), norm(neg0), norm(neg1)
    l00 = (p0 @ n0.T) / temperature
    l01 = (p0 @ p1.T) / temperature
    l10 = (p1 @ p0.T) / temperature
    l11 = (p1 @ n1.T) / temperature
    d01 = jnp.diag(l01)[:, None]
    d10 = jnp.diag(l10)[:, None]
    logits = jnp.concatenate([
        jnp.concatenate([d01, l00], axis=1),
        jnp.concatenate([d10, l11], axis=1),
    ], axis=0)
    lse = jax.nn.logsumexp(logits, axis=1)
    return jnp.mean(lse - logits[:, 0])


if __name__ == "__main__":
    key = jax.random.PRNGKey(0)
    ks = jax.random.split(key, 8)

    # Case 1: lane-dense shapes, 2x2 grid -> exercises the online-logsumexp
    # accumulation over negative tiles and the parallel row axis.
    B, C = 32, 128
    pos0 = jax.random.normal(ks[0], (B, C), dtype=jnp.float32)
    pos1 = jax.random.normal(ks[1], (B, C), dtype=jnp.float32)
    neg0 = jax.random.normal(ks[2], (B, C), dtype=jnp.float32)
    neg1 = jax.random.normal(ks[3], (B, C), dtype=jnp.float32)
    out1 = {'positive': (pos0, pos1), 'negative': (neg0, neg1)}

    loss1 = jax.block_until_ready(
        ntxent_negative_mined_loss(out1, temperature=0.1, tile_b=16, tile_n=16))
    ref1 = jax.block_until_ready(_reference_loss(out1, temperature=0.1))
    assert jnp.allclose(loss1, ref1, rtol=1e-5, atol=1e-5), (loss1, ref1)

    # Case 2: ragged shapes -> exercises row/feature padding and the in-kernel
    # masking of padded negative columns.
    B2, C2 = 20, 72
    pos0b = jax.random.normal(ks[4], (B2, C2), dtype=jnp.float32)
    pos1b = jax.random.normal(ks[5], (B2, C2), dtype=jnp.float32)
    neg0b = jax.random.normal(ks[6], (B2, C2), dtype=jnp.float32)
    neg1b = jax.random.normal(ks[7], (B2, C2), dtype=jnp.float32)
    out2 = {'positive': (pos0b, pos1b), 'negative': (neg0b, neg1b)}

    loss2 = jax.block_until_ready(
        ntxent_negative_mined_loss(out2, temperature=0.1))
    ref2 = jax.block_until_ready(_reference_loss(out2, temperature=0.1))
    assert jnp.allclose(loss2, ref2, rtol=1e-5, atol=1e-5), (loss2, ref2)

    print("KERNEL_OK")
</pallas_src>

<mosaic_0001>
module attributes {stable_mosaic.version = 11 : i64} {
  func.func @_ntxent_mined_kernel(%arg0: i32, %arg1: i32, %arg2: memref<16x128xf32, #tpu.memory_space<vmem>>, %arg3: memref<16x128xf32, #tpu.memory_space<vmem>>, %arg4: memref<16x128xf32, #tpu.memory_space<vmem>>, %arg5: memref<16x128xf32, #tpu.memory_space<vmem>>, %arg6: memref<16x1xf32, #tpu.memory_space<vmem>>, %arg7: memref<16x1xf32, #tpu.memory_space<vmem>>, %arg8: memref<16x1xf32, #tpu.memory_space<vmem>>, %arg9: memref<16x1xf32, #tpu.memory_space<vmem>>, %arg10: memref<16x1xf32, #tpu.memory_space<vmem>>, %arg11: memref<16x1xf32, #tpu.memory_space<vmem>>, %arg12: memref<16x1xf32, #tpu.memory_space<vmem>>) attributes {dimension_semantics = [#tpu.dimension_semantics<parallel>, #tpu.dimension_semantics<arbitrary>], iteration_bounds = array<i64: 2, 2>, scalar_prefetch = 0 : i64, scratch_operands = 5 : i64, tpu.core_type = #tpu.core_type<tc>, window_params = [{transform_indices = @transform_0, window_bounds = array<i64: 16, 128>}, {transform_indices = @transform_1, window_bounds = array<i64: 16, 128>}, {transform_indices = @transform_2, window_bounds = array<i64: 16, 128>}, {transform_indices = @transform_3, window_bounds = array<i64: 16, 128>}, {transform_indices = @transform_4, window_bounds = array<i64: 16, 1>}, {transform_indices = @transform_5, window_bounds = array<i64: 16, 1>}]} {
    %c0 = arith.constant 0 : index
    %c0_0 = arith.constant 0 : index
    %0 = vector.load %arg2[%c0, %c0_0] : memref<16x128xf32, #tpu.memory_space<vmem>>, vector<16x128xf32>
    %1 = arith.mulf %0, %0 : vector<16x128xf32>
    %cst = arith.constant dense<0.000000e+00> : vector<16xf32>
    %2 = vector.multi_reduction <add>, %1, %cst [1] : vector<16x128xf32> to vector<16xf32>
    %3 = vector.shape_cast %2 : vector<16xf32> to vector<16x1xf32>
    %cst_1 = arith.constant 1.000000e-24 : f32
    %4 = vector.broadcast %cst_1 : f32 to vector<16x1xf32>
    %5 = arith.maximumf %3, %4 : vector<16x1xf32>
    %6 = math.rsqrt %5 : vector<16x1xf32>
    %cst_2 = arith.constant 1.000000e+01 : f32
    %7 = vector.broadcast %cst_2 : f32 to vector<16x1xf32>
    %8 = arith.mulf %6, %7 : vector<16x1xf32>
    %9 = vector.broadcast %8 : vector<16x1xf32> to vector<16x128xf32>
    %10 = arith.mulf %0, %9 : vector<16x128xf32>
    %c0_3 = arith.constant 0 : index
    %c0_4 = arith.constant 0 : index
    %11 = vector.load %arg3[%c0_3, %c0_4] : memref<16x128xf32, #tpu.memory_space<vmem>>, vector<16x128xf32>
    %12 = arith.mulf %11, %11 : vector<16x128xf32>
    %cst_5 = arith.constant dense<0.000000e+00> : vector<16xf32>
    %13 = vector.multi_reduction <add>, %12, %cst_5 [1] : vector<16x128xf32> to vector<16xf32>
    %14 = vector.shape_cast %13 : vector<16xf32> to vector<16x1xf32>
    %cst_6 = arith.constant 1.000000e-24 : f32
    %15 = vector.broadcast %cst_6 : f32 to vector<16x1xf32>
    %16 = arith.maximumf %14, %15 : vector<16x1xf32>
    %17 = math.rsqrt %16 : vector<16x1xf32>
    %cst_7 = arith.constant 1.000000e+00 : f32
    %18 = vector.broadcast %cst_7 : f32 to vector<16x1xf32>
    %19 = arith.mulf %17, %18 : vector<16x1xf32>
    %20 = vector.broadcast %19 : vector<16x1xf32> to vector<16x128xf32>
    %21 = arith.mulf %11, %20 : vector<16x128xf32>
    %c0_8 = arith.constant 0 : index
    %c0_9 = arith.constant 0 : index
    %22 = vector.load %arg4[%c0_8, %c0_9] : memref<16x128xf32, #tpu.memory_space<vmem>>, vector<16x128xf32>
    %23 = arith.mulf %22, %22 : vector<16x128xf32>
    %cst_10 = arith.constant dense<0.000000e+00> : vector<16xf32>
    %24 = vector.multi_reduction <add>, %23, %cst_10 [1] : vector<16x128xf32> to vector<16xf32>
    %25 = vector.shape_cast %24 : vector<16xf32> to vector<16x1xf32>
    %cst_11 = arith.constant 1.000000e-24 : f32
    %26 = vector.broadcast %cst_11 : f32 to vector<16x1xf32>
    %27 = arith.maximumf %25, %26 : vector<16x1xf32>
    %28 = math.rsqrt %27 : vector<16x1xf32>
    %cst_12 = arith.constant 1.000000e+00 : f32
    %29 = vector.broadcast %cst_12 : f32 to vector<16x1xf32>
    %30 = arith.mulf %28, %29 : vector<16x1xf32>
    %31 = vector.broadcast %30 : vector<16x1xf32> to vector<16x128xf32>
    %32 = arith.mulf %22, %31 : vector<16x128xf32>
    %c0_13 = arith.constant 0 : index
    %c0_14 = arith.constant 0 : index
    %33 = vector.load %arg5[%c0_13, %c0_14] : memref<16x128xf32, #tpu.memory_space<vmem>>, vector<16x128xf32>
    %34 = arith.mulf %33, %33 : vector<16x128xf32>
    %cst_15 = arith.constant dense<0.000000e+00> : vector<16xf32>
    %35 = vector.multi_reduction <add>, %34, %cst_15 [1] : vector<16x128xf32> to vector<16xf32>
    %36 = vector.shape_cast %35 : vector<16xf32> to vector<16x1xf32>
    %cst_16 = arith.constant 1.000000e-24 : f32
    %37 = vector.broadcast %cst_16 : f32 to vector<16x1xf32>
    %38 = arith.maximumf %36, %37 : vector<16x1xf32>
    %39 = math.rsqrt %38 : vector<16x1xf32>
    %cst_17 = arith.constant 1.000000e+01 : f32
    %40 = vector.broadcast %cst_17 : f32 to vector<16x1xf32>
    %41 = arith.mulf %39, %40 : vector<16x1xf32>
    %42 = vector.broadcast %41 : vector<16x1xf32> to vector<16x128xf32>
    %43 = arith.mulf %33, %42 : vector<16x128xf32>
    %c0_i32 = arith.constant 0 : i32
    %44 = arith.cmpi eq, %arg1, %c0_i32 : i32
    %45 = arith.extui %44 : i1 to i32
    %c0_i32_18 = arith.constant 0 : i32
    %46 = arith.cmpi ne, %45, %c0_i32_18 : i32
    scf.if %46 {
      %84 = arith.mulf %10, %21 : vector<16x128xf32>
      %cst_42 = arith.constant dense<0.000000e+00> : vector<16xf32>
      %85 = vector.multi_reduction <add>, %84, %cst_42 [1] : vector<16x128xf32> to vector<16xf32>
      %86 = vector.shape_cast %85 : vector<16xf32> to vector<16x1xf32>
      %c0_43 = arith.constant 0 : index
      %c0_44 = arith.constant 0 : index
      %87 = vector.load %arg12[%c0_43, %c0_44] : memref<16x1xf32, #tpu.memory_space<vmem>>, vector<16x1xf32>
      tpu.vector_store %arg12[%c0_43, %c0_44], %86 {strides = array<i32>} : memref<16x1xf32, #tpu.memory_space<vmem>>, vector<16x1xf32>,
      %c0_45 = arith.constant 0 : index
      %c0_46 = arith.constant 0 : index
      %88 = vector.load %arg8[%c0_45, %c0_46] : memref<16x1xf32, #tpu.memory_space<vmem>>, vector<16x1xf32>
      tpu.vector_store %arg8[%c0_45, %c0_46], %86 {strides = array<i32>} : memref<16x1xf32, #tpu.memory_space<vmem>>, vector<16x1xf32>,
      %c0_47 = arith.constant 0 : index
      %c0_48 = arith.constant 0 : index
      %89 = vector.load %arg10[%c0_47, %c0_48] : memref<16x1xf32, #tpu.memory_space<vmem>>, vector<16x1xf32>
      tpu.vector_store %arg10[%c0_47, %c0_48], %86 {strides = array<i32>} : memref<16x1xf32, #tpu.memory_space<vmem>>, vector<16x1xf32>,
      %cst_49 = arith.constant 1.000000e+00 : f32
      %90 = vector.broadcast %cst_49 : f32 to vector<16x1xf32>
      %c0_50 = arith.constant 0 : index
      %c0_51 = arith.constant 0 : index
      %91 = vector.load %arg9[%c0_50, %c0_51] : memref<16x1xf32, #tpu.memory_space<vmem>>, vector<16x1xf32>
      tpu.vector_store %arg9[%c0_50, %c0_51], %90 {strides = array<i32>} : memref<16x1xf32, #tpu.memory_space<vmem>>, vector<16x1xf32>,
      %cst_52 = arith.constant 1.000000e+00 : f32
      %92 = vector.broadcast %cst_52 : f32 to vector<16x1xf32>
      %c0_53 = arith.constant 0 : index
      %c0_54 = arith.constant 0 : index
      %93 = vector.load %arg11[%c0_53, %c0_54] : memref<16x1xf32, #tpu.memory_space<vmem>>, vector<16x1xf32>
      tpu.vector_store %arg11[%c0_53, %c0_54], %92 {strides = array<i32>} : memref<16x1xf32, #tpu.memory_space<vmem>>, vector<16x1xf32>,
    } else {
    }
    %cst_19 = arith.constant dense<0.000000e+00> : vector<16x16xf32>
    %47 = tpu.matmul %10, %32, %cst_19 {dimension_numbers = #tpu.dot_dimension_numbers<[1], [1], [0], [0], [0, 0, 1, 0], [], []>} : vector<16x128xf32>, vector<16x128xf32>, vector<16x16xf32> -> vector<16x16xf32>
    %cst_20 = arith.constant dense<0.000000e+00> : vector<16x16xf32>
    %48 = tpu.matmul %21, %43, %cst_20 {dimension_numbers = #tpu.dot_dimension_numbers<[1], [1], [0], [0], [0, 0, 1, 0], [], []>} : vector<16x128xf32>, vector<16x128xf32>, vector<16x16xf32> -> vector<16x16xf32>
    %c0_21 = arith.constant 0 : index
    %c0_22 = arith.constant 0 : index
    %49 = vector.load %arg8[%c0_21, %c0_22] : memref<16x1xf32, #tpu.memory_space<vmem>>, vector<16x1xf32>
    %cst_23 = arith.constant dense<0xFF800000> : vector<16xf32>
    %50 = vector.multi_reduction <maximumf>, %47, %cst_23 [1] : vector<16x16xf32> to vector<16xf32>
    %51 = vector.shape_cast %50 : vector<16xf32> to vector<16x1xf32>
    %52 = arith.maximumf %49, %51 : vector<16x1xf32>
    %53 = arith.subf %49, %52 : vector<16x1xf32>
    %54 = math.exp %53 : vector<16x1xf32>
    %c0_24 = arith.constant 0 : index
    %c0_25 = arith.constant 0 : index
    %55 = vector.load %arg9[%c0_24, %c0_25] : memref<16x1xf32, #tpu.memory_space<vmem>>, vector<16x1xf32>
    %56 = arith.mulf %55, %54 : vector<16x1xf32>
    %57 = vector.broadcast %52 : vector<16x1xf32> to vector<16x16xf32>
    %58 = arith.subf %47, %57 : vector<16x16xf32>
    %59 = math.exp %58 : vector<16x16xf32>
    %cst_26 = arith.constant dense<0.000000e+00> : vector<16xf32>
    %60 = vector.multi_reduction <add>, %59, %cst_26 [1] : vector<16x16xf32> to vector<16xf32>
    %61 = vector.shape_cast %60 : vector<16xf32> to vector<16x1xf32>
    %62 = arith.addf %56, %61 : vector<16x1xf32>
    %c0_27 = arith.constant 0 : index
    %c0_28 = arith.constant 0 : index
    %63 = vector.load %arg9[%c0_27, %c0_28] : memref<16x1xf32, #tpu.memory_space<vmem>>, vector<16x1xf32>
    tpu.vector_store %arg9[%c0_27, %c0_28], %62 {strides = array<i32>} : memref<16x1xf32, #tpu.memory_space<vmem>>, vector<16x1xf32>,
    %c0_29 = arith.constant 0 : index
    %c0_30 = arith.constant 0 : index
    %64 = vector.load %arg8[%c0_29, %c0_30] : memref<16x1xf32, #tpu.memory_space<vmem>>, vector<16x1xf32>
    tpu.vector_store %arg8[%c0_29, %c0_30], %52 {strides = array<i32>} : memref<16x1xf32, #tpu.memory_space<vmem>>, vector<16x1xf32>,
    %c0_31 = arith.constant 0 : index
    %c0_32 = arith.constant 0 : index
    %65 = vector.load %arg10[%c0_31, %c0_32] : memref<16x1xf32, #tpu.memory_space<vmem>>, vector<16x1xf32>
    %cst_33 = arith.constant dense<0xFF800000> : vector<16xf32>
    %66 = vector.multi_reduction <maximumf>, %48, %cst_33 [1] : vector<16x16xf32> to vector<16xf32>
    %67 = vector.shape_cast %66 : vector<16xf32> to vector<16x1xf32>
    %68 = arith.maximumf %65, %67 : vector<16x1xf32>
    %69 = arith.subf %65, %68 : vector<16x1xf32>
    %70 = math.exp %69 : vector<16x1xf32>
    %c0_34 = arith.constant 0 : index
    %c0_35 = arith.constant 0 : index
    %71 = vector.load %arg11[%c0_34, %c0_35] : memref<16x1xf32, #tpu.memory_space<vmem>>, vector<16x1xf32>
    %72 = arith.mulf %71, %70 : vector<16x1xf32>
    %73 = vector.broadcast %68 : vector<16x1xf32> to vector<16x16xf32>
    %74 = arith.subf %48, %73 : vector<16x16xf32>
    %75 = math.exp %74 : vector<16x16xf32>
    %cst_36 = arith.constant dense<0.000000e+00> : vector<16xf32>
    %76 = vector.multi_reduction <add>, %75, %cst_36 [1] : vector<16x16xf32> to vector<16xf32>
    %77 = vector.shape_cast %76 : vector<16xf32> to vector<16x1xf32>
    %78 = arith.addf %72, %77 : vector<16x1xf32>
    %c0_37 = arith.constant 0 : index
    %c0_38 = arith.constant 0 : index
    %79 = vector.load %arg11[%c0_37, %c0_38] : memref<16x1xf32, #tpu.memory_space<vmem>>, vector<16x1xf32>
    tpu.vector_store %arg11[%c0_37, %c0_38], %78 {strides = array<i32>} : memref<16x1xf32, #tpu.memory_space<vmem>>, vector<16x1xf32>,
    %c0_39 = arith.constant 0 : index
    %c0_40 = arith.constant 0 : index
    %80 = vector.load %arg10[%c0_39, %c0_40] : memref<16x1xf32, #tpu.memory_space<vmem>>, vector<16x1xf32>
    tpu.vector_store %arg10[%c0_39, %c0_40], %68 {strides = array<i32>} : memref<16x1xf32, #tpu.memory_space<vmem>>, vector<16x1xf32>,
    %c1_i32 = arith.constant 1 : i32
    %81 = arith.cmpi eq, %arg1, %c1_i32 : i32
    %82 = arith.extui %81 : i1 to i32
    %c0_i32_41 = arith.constant 0 : i32
    %83 = arith.cmpi ne, %82, %c0_i32_41 : i32
    scf.if %83 {
      %c0_42 = arith.constant 0 : index
      %c0_43 = arith.constant 0 : index
      %84 = vector.load %arg12[%c0_42, %c0_43] : memref<16x1xf32, #tpu.memory_space<vmem>>, vector<16x1xf32>
      %c0_44 = arith.constant 0 : index
      %c0_45 = arith.constant 0 : index
      %85 = vector.load %arg8[%c0_44, %c0_45] : memref<16x1xf32, #tpu.memory_space<vmem>>, vector<16x1xf32>
      %c0_46 = arith.constant 0 : index
      %c0_47 = arith.constant 0 : index
      %86 = vector.load %arg9[%c0_46, %c0_47] : memref<16x1xf32, #tpu.memory_space<vmem>>, vector<16x1xf32>
      %87 = math.log %86 : vector<16x1xf32>
      %88 = arith.addf %85, %87 : vector<16x1xf32>
      %89 = arith.subf %88, %84 : vector<16x1xf32>
      %c0_48 = arith.constant 0 : index
      %c0_49 = arith.constant 0 : index
      %90 = vector.load %arg6[%c0_48, %c0_49] : memref<16x1xf32, #tpu.memory_space<vmem>>, vector<16x1xf32>
      tpu.vector_store %arg6[%c0_48, %c0_49], %89 {strides = array<i32>} : memref<16x1xf32, #tpu.memory_space<vmem>>, vector<16x1xf32>,
      %c0_50 = arith.constant 0 : index
      %c0_51 = arith.constant 0 : index
      %91 = vector.load %arg10[%c0_50, %c0_51] : memref<16x1xf32, #tpu.memory_space<vmem>>, vector<16x1xf32>
      %c0_52 = arith.constant 0 : index
      %c0_53 = arith.constant 0 : index
      %92 = vector.load %arg11[%c0_52, %c0_53] : memref<16x1xf32, #tpu.memory_space<vmem>>, vector<16x1xf32>
      %93 = math.log %92 : vector<16x1xf32>
      %94 = arith.addf %91, %93 : vector<16x1xf32>
      %95 = arith.subf %94, %84 : vector<16x1xf32>
      %c0_54 = arith.constant 0 : index
      %c0_55 = arith.constant 0 : index
      %96 = vector.load %arg7[%c0_54, %c0_55] : memref<16x1xf32, #tpu.memory_space<vmem>>, vector<16x1xf32>
      tpu.vector_store %arg7[%c0_54, %c0_55], %95 {strides = array<i32>} : memref<16x1xf32, #tpu.memory_space<vmem>>, vector<16x1xf32>,
    } else {
    }
    return
  }
  func.func @transform_0(%arg0: i32, %arg1: i32) -> (i32, i32) {
    %c0_i32 = arith.constant 0 : i32
    %c0_i32_0 = arith.constant 0 : i32
    return %arg0, %c0_i32 : i32, i32
  }
  func.func @transform_1(%arg0: i32, %arg1: i32) -> (i32, i32) {
    %c0_i32 = arith.constant 0 : i32
    %c0_i32_0 = arith.constant 0 : i32
    return %arg0, %c0_i32 : i32, i32
  }
  func.func @transform_2(%arg0: i32, %arg1: i32) -> (i32, i32) {
    %c0_i32 = arith.constant 0 : i32
    %c0_i32_0 = arith.constant 0 : i32
    return %arg1, %c0_i32 : i32, i32
  }
  func.func @transform_3(%arg0: i32, %arg1: i32) -> (i32, i32) {
    %c0_i32 = arith.constant 0 : i32
    %c0_i32_0 = arith.constant 0 : i32
    return %arg1, %c0_i32 : i32, i32
  }
  func.func @transform_4(%arg0: i32, %arg1: i32) -> (i32, i32) {
    %c0_i32 = arith.constant 0 : i32
    %c0_i32_0 = arith.constant 0 : i32
    return %arg0, %c0_i32 : i32, i32
  }
  func.func @transform_5(%arg0: i32, %arg1: i32) -> (i32, i32) {
    %c0_i32 = arith.constant 0 : i32
    %c0_i32_0 = arith.constant 0 : i32
    return %arg0, %c0_i32 : i32, i32
  }
}

</mosaic_0001>

<bundles_post_ra>
// kernel: tpu_custom_call.1
= control target key start
LH: loop header
LB: loop body
LE: loop exit
PB: predicated region body
PF: predicated region fallthrough
CT: control target
= control target key end

     0   :  { %s1720_s0 = inlined_call_operand.hbm [shape: f32[32,128], index: 0, kind: input, shape index: {}]   ;;  %s1721_s1 = inlined_call_operand.hbm [shape: f32[32,128], index: 1, kind: input, shape index: {}]   ;;  %s1722_s2 = inlined_call_operand.hbm [shape: f32[32,128], index: 2, kind: input, shape index: {}]   ;;  %s1723_s3 = inlined_call_operand.hbm [shape: f32[32,128], index: 3, kind: input, shape index: {}]   ;;  %s1724_s4 = inlined_call_operand.vmem [shape: f32[32,1], index: 4, kind: output, shape index: {0}]   ;;  %s1725_s5 = inlined_call_operand.vmem [shape: f32[32,1], index: 5, kind: output, shape index: {1}]  }
   0x1   :  { %1734 = sst [smem:[#allocation23_spill]] %s1720_s0 }
   0x2   :  { %1735 = sst [smem:[#allocation24_spill]] %s1721_s1 }
   0x3   :  { %1736 = sst [smem:[#allocation25_spill]] %s1725_s5 }
   0x4   :  { %11 = vsyncpa [#allocation8], 0 }
   0x5   :  { %13 = vsyncpa [#allocation8 + $0x1], 0 }
   0x6   :  { %14 = vsyncpa [#allocation10], 0 }
   0x7   :  { %16 = vsyncpa [#allocation10 + $0x1], 0 }
   0x8   :  { %17 = vsyncpa [#allocation13], 0 }
   0x9   :  { %19 = vsyncpa [#allocation13 + $0x1], 0  ;;  %s1363_s18 = smov 0   ;;  %s1365_s19 = smov 0  }
   0xa   :  { %s1367_s20 = smov 0   ;;  %s1369_s21 = smov 0  }
   0xb   :  { %s1371_s22 = smov 0   ;;  %s1373_s23 = smov 0  }
   0xc   :  { %s1375_s24 = smov 0   ;;  %s1377_s25 = smov 0  }
   0xd   :  { %s1379_s26 = smov 0   ;;  %s1381_s27 = smov 0  }
   0xe   :  { %s1383_s28 = smov 0  }
   0xf LB: > { %1737 = sst [smem:[#allocation18_spill]] %s1311_s24  ;;  %s1726_s29 = sadd.s32 4294967295, %s1327_s28   ;;  %s1327_s28 = sphi %s1383_s28, %s25_s28   ;;  %s1323_s27 = sphi %s1381_s27, %s1761_s27   ;;  %s1319_s26 = sphi %s1379_s26, %s1769_s26   ;;  %s1315_s25 = sphi %s1377_s25, %s1759_s25   ;;  %s1311_s24 = sphi %s1375_s24, %s1768_s24   ;;  %s1307_s23 = sphi %s1373_s23, %s1767_s23   ;;  %s1303_s22 = sphi %s1371_s22, %s1766_s22   ;;  %s1299_s21 = sphi %s1369_s21, %s1765_s21   ;;  %s1295_s20 = sphi %s1367_s20, %s1764_s20   ;;  %s1291_s19 = sphi %s1365_s19, %s1763_s19   ;;  %s1287_s18 = sphi %s1363_s18, %s1762_s18  }
  0x10   : > { %1738 = sst [smem:[#allocation19_spill]] %s1323_s27  ;;  %p51_p0 = scmp.ne.s32.totalorder %s1307_s23, %s1303_s22 }
  0x11   : > { %p52_p1 = scmp.eq.s32.totalorder %s1327_s28, 0  ;;  %p57_p2 = scmp.ne.s32.totalorder %s1303_s22, %s1299_s21 }
  0x12   : > { %p1425_p3 = scmp.eq.s32.totalorder %s1726_s29, 0  ;;  %p969_p5 = scmp.lt.s32.totalorder %s1327_s28, 4 }
  0x13   : > { %p53_p4 = por %p52_p1, %p51_p0  ;;  %s211_s9 = sand.u32 1, %s1307_s23  }
  0x14   : > { %p1434_p6 = por %p1425_p3, %p57_p2  ;;  %s915_s10 = sshll.u32 %s211_s9, 4 }
  0x15   : > { %s940_s11 = sshll.u32 %s1323_s27, 4  ;;  %p1442_p7 = pnand %p969_p5, %p53_p4 }
  0x16   : > { %s233_s13 = sand.u32 1, %s1327_s28   ;;  %s1742_s1 = sld [smem:[#allocation24_spill]] }
  0x17   : > { %s237_s21 = scalar_lea.vmem [#allocation9], %s915_s10  ;;  %s1450_s6 = scalar_lea.sflag [#allocation10], %s233_s13 }
  0x18   : > { %s245_s29 = sshll.u32 %s237_s21, 4  ;;  %s1727_s30 = smov 128   ;;  %s246_s29 = int_to_ptr.vmem [resolvable:$true] %s245_s29 }
  0x19   : > { %s1729_s24 = smov 8   ;;  %p927_p8 = scmp.ge.s32.totalorder %s1327_s28, 1 }
  0x1a   : > { %p297_p9 = scmp.lt.s32.totalorder %s1327_s28, 5  ;;  %s1744_s0 = sld [smem:[#allocation23_spill]] }
  0x1b   : > { %s34_s5 = sadd.s32 1, %s1319_s26  ;;  %s96_s13 = sadd.s32 1, %s1295_s20 }
  0x1c   : > { %s242_s16 = scalar_lea.hbm %s1742_s1, %s940_s11  ;;  %p1460_p10 = pnand %p927_p8, %p297_p9 }
  0x1d   : > { %s243_s17 = sshll.u32 %s242_s16, 4  ;;  %s215_s1 = scalar_lea.vmem [#allocation7], %s915_s10  ;;  %s244_s17 = int_to_ptr.hbm [resolvable:$true] %s243_s17 }
  0x1e   : > { %962 = dma.hbm_to_vmem [thread:$0]  (!%p1442_p7), %s244_s17, 256, %s246_s29, %s1450_s6, %s1727_s30, %s1727_s30, %s1729_s24  }
  0x1f   : > { %s223_s29 = sshll.u32 %s215_s1, 4  ;;  %s212_s17 = scalar_lea.sflag [#allocation8], %s211_s9  ;;  %s224_s29 = int_to_ptr.vmem [resolvable:$true] %s223_s29 }
  0x20   : > { %s220_s16 = scalar_lea.hbm %s1744_s0, %s940_s11  ;;  %p35_p11 = scmp.ge.s32.totalorder %s34_s5, 2 }
  0x21   : > { %s221_s21 = sshll.u32 %s220_s16, 4  ;;  %p103_p12 = scmp.ne.s32.totalorder %s1295_s20, %s1291_s19  ;;  %s222_s21 = int_to_ptr.hbm [resolvable:$true] %s221_s21 }
  0x22   : > { %959 = dma.hbm_to_vmem [thread:$0]  (!%p1442_p7), %s222_s21, 256, %s224_s29, %s212_s17, %s1727_s30, %s1727_s30, %s1729_s24  }
  0x23   : > { %p109_p13 = scmp.ne.s32.totalorder %s1291_s19, %s1287_s18  ;;  %s257_s11 = sand.u32 1, %s1295_s20  }
  0x24   : > { %s1771_s5 = smov (%p35_p11, %s34_s5), 0  ;;  %s1746_s1 = sadd.s32 1, %s1323_s27 }
  0x25   : > { %1745 = sst [smem:[#allocation20_spill]] %s1771_s5  ;;  %s1773_s1 = smov (!%p35_p11, %s1746_s1), %s1323_s27 }
  0x26   : > { %s93_s9 = ssub.s32 %s1319_s26, %s1771_s5  ;;  %p1488_p0 = por %p103_p12, %p52_p1 }
  0x27   : > { %p39_p2 = scmp.ge.s32.totalorder %s1773_s1, 2  ;;  %p94_p4 = scmp.eq.s32.totalorder %s93_s9, 0 }
  0x28   : > { %p1494_p7 = por %p109_p13, %p1425_p3  ;;  %s921_s12 = sshll.u32 %s257_s11, 4 }
  0x29   : > { %s1775_s1 = smov (%p39_p2, %s1773_s1), 0  ;;  %s942_s21 = sshll.u32 %s1319_s26, 4 }
  0x2a   : > { %1749 = sst [smem:[#allocation21_spill]] %s1775_s1  ;;  %s41_s16 = ssub.s32 %s1323_s27, %s1775_s1 }
  0x2b   : > { %s1501_s15 = scalar_select %p94_p4, %s1295_s20, %s96_s13  }
  0x2c   : > { %p42_p1 = scmp.eq.s32.totalorder %s41_s16, 0  ;;  %s264_s30 = scalar_lea.hbm %s1722_s2, %s942_s21 }
  0x2d   : > { %1750 = sst [smem:[#allocation22_spill]] %s1501_s15  ;;  %s259_s9 = scalar_lea.vmem [#allocation11], %s921_s12 }
  0x2e   : > { %s267_s7 = sshll.u32 %s259_s9, 4  ;;  %s1751_s24 = sadd.s32 1, %s1307_s23  ;;  %s268_s7 = int_to_ptr.vmem [resolvable:$true] %s267_s7 }
  0x2f   : > { %s1512_s0 = scalar_select %p42_p1, %s1307_s23, %s1751_s24  }
  0x30   : > { %s265_s5 = sshll.u32 %s264_s30, 4  ;;  %p963_p3 = pnand %p969_p5, %p1488_p0  ;;  %s266_s5 = int_to_ptr.hbm [resolvable:$true] %s265_s5 }
  0x31   : > { %s286_s16 = scalar_lea.hbm %s1723_s3, %s942_s21  ;;  %s1752_s1 = smov 8  }
  0x32   : > { %s1753_s27 = smov 128   ;;  %s287_s29 = sshll.u32 %s286_s16, 4  ;;  %s288_s29 = int_to_ptr.hbm [resolvable:$true] %s287_s29 }
  0x33   : > { %965 = dma.hbm_to_vmem [thread:$0]  (!%p963_p3), %s266_s5, 256, %s268_s7, %s1450_s6, %s1753_s27, %s1753_s27, %s1752_s1  }
  0x34   : > { %s281_s17 = scalar_lea.vmem [#allocation12], %s921_s12  ;;  %s278_s24 = scalar_lea.sflag [#allocation13], %s257_s11 }
  0x35   : > { %s289_s9 = sshll.u32 %s281_s17, 4  ;;  %301 = sbr.rel (%p1460_p10) target bundleno = 886 (0x376), region = 36  ;;  %s290_s9 = int_to_ptr.vmem [resolvable:$true] %s289_s9 }
  0x36   : > { %968 = dma.hbm_to_vmem [thread:$0]  (!%p963_p3), %s288_s29, 256, %s290_s9, %s278_s24, %s1753_s27, %s1753_s27, %s1752_s1  }
  0x37   : > { %s303_s30 = sand.u32 (!%p1460_p10), 1, %s1303_s22  }
  0x38   : > { %s1531_s10 = sshll.u32 (!%p1460_p10), %s303_s30, 4  ;;  %s304_s5 = scalar_lea.sflag (!%p1460_p10), [#allocation8], %s303_s30 }
  0x39   : > { %s307_s6 = scalar_lea.vmem (!%p1460_p10), [#allocation7], %s1531_s10 }
  0x3a   : > { %1270 = dma.done.wait (%p1434_p6), %s304_s5, 256  }
  0x3b   : > { %1272 = vsyncadd (%p1434_p6), %s304_s5, 4294967040  ;;  %s1754_s11 = sadd.s32 4294967295, %s1327_s28   ;;  %s317_s1 = scalar_lea.vmem [#allocation9], %s1531_s10 }
  0x3c   : > { %s313_s27 = sand.u32 1, %s1754_s11  }
  0x3d   : > { %s314_s14 = scalar_lea.sflag [#allocation10], %s313_s27 }
  0x3e   : > { %1274 = dma.done.wait (%p1434_p6), %s314_s14, 256  }
  0x3f   : > { %1276 = vsyncadd (%p1434_p6), %s314_s14, 4294967040  ;;  %s325_s12 = sand.u32 1, %s1291_s19  }
  0x40   : > { %s930_s15 = sshll.u32 %s325_s12, 4 }
  0x41   : > { %s327_s21 = scalar_lea.vmem [#allocation11], %s930_s15 }
  0x42   : > { %1278 = dma.done.wait (%p1494_p7), %s314_s14, 256  }
  0x43   : > { %1280 = vsyncadd (%p1494_p7), %s314_s14, 4294967040  ;;  %s334_s7 = scalar_lea.sflag [#allocation13], %s325_s12  ;;  %s337_s13 = scalar_lea.vmem [#allocation12], %s930_s15 }
  0x44   : > { %1282 = dma.done.wait (%p1494_p7), %s334_s7, 256  }
  0x45   : > { %1284 = vsyncadd (%p1494_p7), %s334_s7, 4294967040  ;;  %v1554_v0 = vld [vmem:[%s337_s13] sm:$0xff]  ;;  %v1566_v6 = vld [vmem:[%s337_s13 + $0x8] sm:$0xff]  ;;  %s932_s8 = sshll.u32 %s1315_s25, 1  ;;  %s1755_s30 = sld [smem:[#allocation25_spill]] }
  0x46   : > { %v1556_v1 = vld [vmem:[%s317_s1] sm:$0xff]  ;;  %v501_v3 = vmul.f32 %v1554_v0, %v1554_v0  ;;  %v1568_v7 = vld [vmem:[%s317_s1 + $0x8] sm:$0xff]  ;;  %v502_v9 = vmul.f32 %v1566_v6, %v1566_v6  ;;  %p390_p5 = scmp.lt.s32.totalorder %s932_s8, 3  ;;  %s1756_s25 = sld [smem:[#allocation18_spill]] }
  0x47   : > { %v1558_v2 = vld [vmem:[%s307_s6] sm:$0xff]  ;;  %v437_v4 = vmul.f32 %v1556_v1, %v1556_v1  ;;  %v1570_v8 = vld [vmem:[%s307_s6 + $0x8] sm:$0xff]  ;;  %v438_v10 = vmul.f32 %v1568_v7, %v1568_v7 }
  0x48   : > { %v403_v5 = vmul.f32 %v1558_v2, %v1558_v2  ;;  %503 = vadd.xlane.f32.xlu1 %v501_v3  ;;  %v404_v11 = vmul.f32 %v1570_v8, %v1570_v8  ;;  %v1578_v12 = vld [vmem:[%s327_s21 + $0x8] sm:$0xff]  ;;  %v1580_v13 = vld [vmem:[%s327_s21] sm:$0xff]  ;;  %s1777_s8 = smov (!%p390_p5, %s932_s8), 3 }
  0x49   : > { %439 = vadd.xlane.f32.xlu2 %v437_v4  ;;  %v470_v14 = vmul.f32 %v1578_v12, %v1578_v12  ;;  %v469_v15 = vmul.f32 %v1580_v13, %v1580_v13  ;;  %s933_s18 = sshll.u32 %s1777_s8, 3 }
  0x4a   : > { %405 = vadd.xlane.f32.xlu0 %v403_v5  ;;  %s1590_s17 = scalar_lea.vmem %s1724_s4, %s933_s18 }
  0x4b   : > { %s1595_s10 = scalar_lea.vmem %s1755_s30, %s933_s18 }
  0x4c   : > { %p936_p6 = scmp.ne.s32.totalorder %s1756_s25, 0 }
  0x50   : > { %505 = vadd.xlane.f32.xlu1 %v502_v9 }
  0x51   : > { %441 = vadd.xlane.f32.xlu2 %v438_v10 }
  0x52   : > { %407 = vadd.xlane.f32.xlu0 %v404_v11 }
  0x58   : > { %473 = vadd.xlane.f32.xlu1 %v470_v14 }
  0x5a   : > { %471 = vadd.xlane.f32.xlu0 %v469_v15 }
  0xbb   : > { %v504_v16 = vpop.xlane.xlu1 %503 }
  0xbc   : > { %v440_v17 = vpop.xlane.xlu2 %439  ;;  %v507_v18 = vmax.f32 %v504_v16, 1e-24 }
  0xbd   : > { %v443_v19 = vmax.f32 %v440_v17, 1e-24  ;;  %v406_v20 = vpop.xlane.xlu0 %405 }
  0xbe   : > { %v409_v21 = vmax.f32 %v406_v20, 1e-24  ;;  %1062 = vrsqrt.f32 %v507_v18  ;;  %vm515_vm0 = vweird.f32 %v507_v18 }
  0xbf   : > { %1064 = vrsqrt.f32 %v443_v19  ;;  %vm451_vm2 = vweird.f32 %v443_v19 }
  0xc0   : > { %1066 = vrsqrt.f32 %v409_v21  ;;  %vm417_vm6 = vweird.f32 %v409_v21 }
  0xc3   : > { %v506_v22 = vpop.xlane.xlu1 %505 }
  0xc4   : > { %v442_v23 = vpop.xlane.xlu2 %441  ;;  %v1063_v24 = vpop.eup %1062  ;;  %v1597_v25 = vmax.f32 %v506_v22, 1e-24 }
  0xc5   : > { %v1599_v26 = vmax.f32 %v442_v23, 1e-24  ;;  %v408_v27 = vpop.xlane.xlu0 %407  ;;  %v1065_v28 = vpop.eup %1064  ;;  %v510_v29 = vmul.f32 %v1063_v24, %v507_v18  ;;  %vm516_vm1 = vweird.f32 %v1063_v24 }
  0xc6   : > { %v1601_v30 = vmax.f32 %v408_v27, 1e-24  ;;  %v1067_v31 = vpop.eup %1066  ;;  %v446_v32 = vmul.f32 %v1065_v28, %v443_v19  ;;  %1068 = vrsqrt.f32 %v1597_v25  ;;  %vm452_vm3 = vweird.f32 %v1065_v28  ;;  %vm517_vm5 = vmor %vm515_vm0, %vm516_vm1 }
  0xc7   : > { %v511_v33 = vmul.f32 %v1063_v24, %v510_v29  ;;  %v412_v34 = vmul.f32 %v1067_v31, %v409_v21  ;;  %1070 = vrsqrt.f32 %v1599_v26  ;;  %vm418_vm4 = vweird.f32 %v1067_v31  ;;  %vm453_vm7 = vmor %vm451_vm2, %vm452_vm3 }
  0xc8   : > { %v447_v35 = vmul.f32 %v1065_v28, %v446_v32  ;;  %1072 = vrsqrt.f32 %v1601_v30  ;;  %vm419_vm8 = vmor %vm417_vm6, %vm418_vm4  ;;  %vm525_vm9 = vweird.f32 %v1597_v25  ;;  %vm461_vm11 = vweird.f32 %v1599_v26 }
  0xc9   : > { %v512_v36 = vmul.f32 0.5, %v511_v33  ;;  %v413_v37 = vmul.f32 %v1067_v31, %v412_v34  ;;  %vm427_vm0 = vweird.f32 %v1601_v30 }
  0xca   : > { %v448_v38 = vmul.f32 0.5, %v447_v35 }
  0xcb   : > { %v513_v39 = vsub.f32 1.5, %v512_v36  ;;  %v414_v40 = vmul.f32 0.5, %v413_v37  ;;  %v474_v41 = vpop.xlane.xlu1 %473 }
  0xcc   : > { %v1069_v42 = vpop.eup %1068  ;;  %v449_v43 = vsub.f32 1.5, %v448_v38  ;;  %v1606_v44 = vmax.f32 %v474_v41, 1e-24 }
  0xcd   : > { %v1071_v45 = vpop.eup %1070  ;;  %v514_v46 = vmul.f32 %v1063_v24, %v513_v39  ;;  %v415_v47 = vsub.f32 1.5, %v414_v40  ;;  %v520_v48 = vmul.f32 %v1069_v42, %v1597_v25  ;;  %v472_v59 = vpop.xlane.xlu0 %471  ;;  %vm526_vm10 = vweird.f32 %v1069_v42 }
  0xce   : > { %v1073_v49 = vpop.eup %1072  ;;  %v450_v50 = vmul.f32 %v1065_v28, %v449_v43  ;;  %v456_v51 = vmul.f32 %v1071_v45, %v1599_v26  ;;  %1074 = vrsqrt.f32 %v1606_v44  ;;  %v475_v11 = vmax.f32 %v472_v59, 1e-24  ;;  %vm527_vm14 = vmor %vm525_vm9, %vm526_vm10 }
  0xcf   : > { %v518_v52 = vsel %vm517_vm5, %v1063_v24, %v514_v46  ;;  %v416_v53 = vmul.f32 %v1067_v31, %v415_v47  ;;  %v521_v54 = vmul.f32 %v1069_v42, %v520_v48  ;;  %v422_v55 = vmul.f32 %v1073_v49, %v1601_v30 }
  0xd0   : > { %v529_v56 = vmul.f32 10.0, %v518_v52  ;;  %v454_v57 = vsel %vm453_vm7, %v1065_v28, %v450_v50  ;;  %v457_v58 = vmul.f32 %v1071_v45, %v456_v51  ;;  %vm462_vm12 = vweird.f32 %v1071_v45 }
  0xd1   : > { %v1616_v60 = vmul.f32 %v454_v57, %v1556_v1  ;;  %v420_v61 = vsel %vm419_vm8, %v1067_v31, %v416_v53  ;;  %v522_v62 = vmul.f32 0.5, %v521_v54  ;;  %v423_v63 = vmul.f32 %v1073_v49, %v422_v55  ;;  %vm463_vm15 = vmor %vm461_vm11, %vm462_vm12 }
  0xd2   : > { %v1619_v3 = vmul.f32 %v529_v56, %v1554_v0  ;;  %v431_v4 = vmul.f32 10.0, %v420_v61  ;;  %v458_v5 = vmul.f32 0.5, %v457_v58  ;;  %vm428_vm13 = vweird.f32 %v1073_v49 }
  0xd3   : > { %v523_v9 = vsub.f32 1.5, %v522_v62  ;;  %v424_v10 = vmul.f32 0.5, %v423_v63  ;;  %1076 = vrsqrt.f32 %v475_v11  ;;  %vm429_vm1 = vmor %vm427_vm0, %vm428_vm13  ;;  %vm493_vm3 = vweird.f32 %v1606_v44 }
  0xd4   : > { %v1075_v14 = vpop.eup %1074  ;;  %v1623_v15 = vmul.f32 %v431_v4, %v1558_v2  ;;  %v459_v1 = vsub.f32 1.5, %v458_v5  ;;  %vm483_vm6 = vweird.f32 %v475_v11 }
  0xd5   : > { %v524_v16 = vmul.f32 %v1069_v42, %v523_v9  ;;  %v425_v17 = vsub.f32 1.5, %v424_v10  ;;  %v488_v0 = vmul.f32 %v1075_v14, %v1606_v44  ;;  %vm494_vm2 = vweird.f32 %v1075_v14 }
  0xd6   : > { %v460_v18 = vmul.f32 %v1071_v45, %v459_v1  ;;  %vm495_vm4 = vmor %vm493_vm3, %vm494_vm2 }
  0xd7   : > { %v528_v19 = vsel %vm527_vm14, %v1069_v42, %v524_v16  ;;  %v426_v20 = vmul.f32 %v1073_v49, %v425_v17  ;;  %v489_v2 = vmul.f32 %v1075_v14, %v488_v0 }
  0xd8   : > { %v530_v21 = vmul.f32 10.0, %v528_v19  ;;  %v464_v22 = vsel %vm463_vm15, %v1071_v45, %v460_v18 }
  0xd9   : > { %v466_v23 = vmul.f32 %v464_v22, %v1568_v7  ;;  %v430_v24 = vsel %vm429_vm1, %v1073_v49, %v426_v20  ;;  %v490_v26 = vmul.f32 0.5, %v489_v2  ;;  %v1077_v29 = vpop.eup %1076 }
  0xda   : > { %v532_v27 = vmul.f32 %v530_v21, %v1566_v6  ;;  %v432_v28 = vmul.f32 10.0, %v430_v24  ;;  %v478_v30 = vmul.f32 %v1077_v29, %v475_v11  ;;  %vm484_vm5 = vweird.f32 %v1077_v29 }
  0xdb   : > { %v491_v25 = vsub.f32 1.5, %v490_v26  ;;  %vm485_vm7 = vmor %vm483_vm6, %vm484_vm5 }
  0xdc   : > { %v434_v31 = vmul.f32 %v432_v28, %v1570_v8  ;;  %v479_v34 = vmul.f32 %v1077_v29, %v478_v30 }
  0xdd   : > { %v492_v32 = vmul.f32 %v1075_v14, %v491_v25 }
  0xde   : > { %v480_v7 = vmul.f32 0.5, %v479_v34 }
  0xdf   : > { %v496_v33 = vsel %vm495_vm4, %v1075_v14, %v492_v32 }
  0xe0   : > { %v498_v35 = vmul.f32 %v496_v33, %v1578_v12  ;;  %v481_v36 = vsub.f32 1.5, %v480_v7 }
  0xe1   : > { %536 = sbr.rel (%p936_p6) target bundleno = 359 (0x167), region = 56 }
  0xe2   : > { %v482_v37 = vmul.f32 %v1077_v29, %v481_v36 }
  0xe4   : > { %v486_v6 = vsel %vm485_vm7, %v1077_v29, %v482_v37 }
  0xe5   : > { %v497_v38 = vmul.f32 %v486_v6, %v1580_v13 }
  0xe6   : > { %v537_v8 = vmul.f32 %v1616_v60, %v1623_v15  ;;  %vm543_vm8 = vcmask 7168   ;;  %v1331_v39 = vmov 1.0   ;;  %v538_v12 = vmul.f32 %v466_v23, %v434_v31 }
  0xe7   : > { %550 = vst.msk [vmem:[#allocation3] sm:$0xff] %vm543_vm8, %v1331_v39 }
  0xe8   : > { %539 = vadd.xlane.f32.xlu0 %v537_v8  ;;  %551 = vst.msk [vmem:[#allocation3 + $0x8] sm:$0xff] %vm543_vm8, %v1331_v39 }
  0xe9   : > { %552 = vst.msk [vmem:[#allocation5] sm:$0xff] %vm543_vm8, %v1331_v39 }
  0xea   : > { %553 = vst.msk [vmem:[#allocation5 + $0x8] sm:$0xff] %vm543_vm8, %v1331_v39 }
  0xf0   : > { %541 = vadd.xlane.f32.xlu0 %v538_v12 }
 0x15b   : > { %v540_v13 = vpop.xlane.xlu0 %539 }
 0x15c   : > { %544 = vst.msk [vmem:[#allocation6] sm:$0xff] %vm543_vm8, %v540_v13 }
 0x15d   : > { %546 = vst.msk [vmem:[#allocation2] sm:$0xff] %vm543_vm8, %v540_v13 }
 0x15e   : > { %548 = vst.msk [vmem:[#allocation4] sm:$0xff] %vm543_vm8, %v540_v13 }
 0x163   : > { %v542_v40 = vpop.xlane.xlu0 %541 }
 0x164   : > { %545 = vst.msk [vmem:[#allocation6 + $0x8] sm:$0xff] %vm543_vm8, %v542_v40 }
 0x165   : > { %547 = vst.msk [vmem:[#allocation2 + $0x8] sm:$0xff] %vm543_vm8, %v542_v40 }
 0x166   : > { %549 = vst.msk [vmem:[#allocation4 + $0x8] sm:$0xff] %vm543_vm8, %v542_v40 }
 0x167 PF: > { %568 = vmatpush.xpose.msra.mxu0 %v498_v35  ;;  %591 = vmatpush.xpose.msra.mxu1 %v532_v27  ;;  %vm602_vm9 = vcmask 130048   ;;  %v1332_v49 = vmov 0   ;;  %v1657_v50 = vld [vmem:[#allocation4] sm:$0xff]  ;;  %vm645_vm10 = vcmask 7168   ;;  %v666_v39 = vld [vmem:[#allocation5] sm:$0xff]  ;;  %s1757_s5 = sld [smem:[#allocation18_spill]] }
 0x168   : > { %944 = vmatpush.xpose.msra.mxu2 %v498_v35  ;;  %946 = vmatpush.xpose.msra.mxu3 %v532_v27  ;;  %v600_v51 = vld [vmem:[#allocation2] sm:$0xff]  ;;  %v618_v35 = vld [vmem:[#allocation3 + $0x8] sm:$0xff] }
 0x169   : > { %1079 = vset.pattern.permute.xlu0 %v1332_v49  ;;  %1078 = vset.pattern.permute.xlu2 %v1332_v49 }
 0x16a   : > { %1080 = vset.pattern.permute.xlu1 %v1332_v49 }
 0x16b   : > { %569 = vmatpush.xpose.msra.mxu0 %v497_v38  ;;  %592 = vmatpush.xpose.msra.mxu1 %v1619_v3 }
 0x16c   : > { %945 = vmatpush.xpose.msra.mxu2 %v497_v38  ;;  %947 = vmatpush.xpose.msra.mxu3 %v1619_v3  ;;  %v601_v59 = vld [vmem:[#allocation2 + $0x8] sm:$0xff] }
 0x16d   : > { %v651_v58 = vld [vmem:[#allocation4 + $0x8] sm:$0xff]  ;;  %p937_p8 = scmp.ne.s32.totalorder %s1757_s5, 1 }
 0x16e   : > { %570 = vmatmul.f32.vlgmr.msra.gmra.mxu0 %v1623_v15  ;;  %593 = vmatmul.f32.vlgmr.msra.gmra.mxu1 %v1616_v60 }
 0x16f   : > { %573 = vmatmul.f32.vlgmr.msra.gmra.mxu2 %v434_v31  ;;  %596 = vmatmul.f32.vlgmr.msra.gmra.mxu3 %v466_v23  ;;  %v617_v31 = vld [vmem:[#allocation3] sm:$0xff] }
 0x1eb   : > { %v571_v41 = vpop.f32.mrf.mxu0  ;;  %v594_v42 = vpop.f32.mrf.mxu1 }
 0x1ec   : > { %v652_v43 = vsel %vm602_vm9, %v594_v42, -inf  ;;  %v603_v44 = vsel %vm602_vm9, %v571_v41, -inf }
 0x1ed   : > { %653 = vmax.xlane.f32.xlu1 %v652_v43  ;;  %604 = vmax.xlane.f32.xlu0 %v603_v44 }
 0x1f2   : > { %v574_v45 = vpop.f32.mrf.mxu2  ;;  %v597_v46 = vpop.f32.mrf.mxu3 }
 0x1f3   : > { %v655_v47 = vsel %vm602_vm9, %v597_v46, -inf  ;;  %v606_v48 = vsel %vm602_vm9, %v574_v45, -inf }
 0x1f5   : > { %656 = vmax.xlane.f32.xlu1 %v655_v47  ;;  %607 = vmax.xlane.f32.xlu0 %v606_v48 }
 0x260   : > { %v654_v52 = vpop.xlane.xlu1 %653  ;;  %v605_v53 = vpop.xlane.xlu0 %604 }
 0x261   : > { %v1660_v54 = vmax.f32 %v1657_v50, %v654_v52  ;;  %v609_v55 = vmax.f32 %v600_v51, %v605_v53 }
 0x263   : > { %v660_v56 = vsub.f32 %v1657_v50, %v1660_v54  ;;  %696 = vst.msk [vmem:[#allocation4] sm:$0xff] %vm645_vm10, %v1660_v54  ;;  %v611_v57 = vsub.f32 %v600_v51, %v609_v55  ;;  %672 = vperm.xlu0 %1079, %v1660_v54   ;;  %623 = vperm.xlu2 %1078, %v609_v55  }
 0x264   : > { %648 = vst.msk [vmem:[#allocation2] sm:$0xff] %vm645_vm10, %v609_v55 }
 0x265   : > { %v613_v28 = vmul.f32 1.442695, %v611_v57  ;;  %v662_v6 = vmul.f32 1.442695, %v660_v56 }
 0x268   : > { %v657_v60 = vpop.xlane.xlu1 %656  ;;  %v608_v61 = vpop.xlane.xlu0 %607 }
 0x269   : > { %v659_v62 = vmax.f32 %v651_v58, %v657_v60  ;;  %v610_v63 = vmax.f32 %v601_v59, %v608_v61 }
 0x26b   : > { %v661_v3 = vsub.f32 %v651_v58, %v659_v62  ;;  %697 = vst.msk [vmem:[#allocation4 + $0x8] sm:$0xff] %vm645_vm10, %v659_v62  ;;  %v612_v4 = vsub.f32 %v601_v59, %v610_v63  ;;  %677 = vperm.xlu1 %1080, %v659_v62   ;;  %628 = vperm.xlu2 %1078, %v610_v63  }
 0x26c   : > { %649 = vst.msk [vmem:[#allocation2 + $0x8] sm:$0xff] %vm645_vm10, %v610_v63 }
 0x26d   : > { %v615_v25 = vmul.f32 1.442695, %v612_v4  ;;  %v664_v38 = vmul.f32 1.442695, %v661_v3 }
 0x2bd   : > { %v624_v5 = vpop.permute.xlu2 %623 }
 0x2be   : > { %v631_v9 = vsub.f32 %v571_v41, %v624_v5 }
 0x2c0   : > { %v633_v10 = vmul.f32 1.442695, %v631_v9 }
 0x2c2   : > { %1081 = vpow2.f32 %v633_v10 }
 0x2c5   : > { %v629_v11 = vpop.permute.xlu2 %628 }
 0x2c6   : > { %v632_v14 = vsub.f32 %v574_v45, %v629_v11 }
 0x2c8   : > { %v1082_v15 = vpop.eup %1081  ;;  %v635_v1 = vmul.f32 1.442695, %v632_v14 }
 0x2c9   : > { %v637_v16 = vsel %vm602_vm9, %v1082_v15, 0.0 }
 0x2ca   : > { %1083 = vpow2.f32 %v635_v1  ;;  %638 = vadd.xlane.f32.xlu2 %v637_v16 }
 0x2d0   : > { %v1084_v17 = vpop.eup %1083 }
 0x2d1   : > { %v640_v0 = vsel %vm602_vm9, %v1084_v17, 0.0 }
 0x2d2   : > { %641 = vadd.xlane.f32.xlu1 %v640_v0 }
 0x2d5   : > { %v673_v18 = vpop.permute.xlu0 %672 }
 0x2d6   : > { %v680_v19 = vsub.f32 %v594_v42, %v673_v18  ;;  %v667_v42 = vld [vmem:[#allocation5 + $0x8] sm:$0xff] }
 0x2d8   : > { %v682_v20 = vmul.f32 1.442695, %v680_v19 }
 0x2da   : > { %1085 = vpow2.f32 %v682_v20 }
 0x2dd   : > { %v678_v2 = vpop.permute.xlu1 %677 }
 0x2de   : > { %v681_v21 = vsub.f32 %v597_v46, %v678_v2 }
 0x2e0   : > { %v1086_v22 = vpop.eup %1085  ;;  %v684_v23 = vmul.f32 1.442695, %v681_v21 }
 0x2e1   : > { %v686_v24 = vsel %vm602_vm9, %v1086_v22, 0.0 }
 0x2e2   : > { %1087 = vpow2.f32 %v684_v23  ;;  %687 = vadd.xlane.f32.xlu0 %v686_v24 }
 0x2e3   : > { %1089 = vpow2.f32 %v613_v28 }
 0x2e4   : > { %1091 = vpow2.f32 %v615_v25 }
 0x2e5   : > { %1093 = vpow2.f32 %v662_v6 }
 0x2e6   : > { %1095 = vpow2.f32 %v664_v38 }
 0x2e8   : > { %v1088_v26 = vpop.eup %1087 }
 0x2e9   : > { %v689_v27 = vsel %vm602_vm9, %v1088_v26, 0.0  ;;  %v1090_v29 = vpop.eup %1089 }
 0x2ea   : > { %690 = vadd.xlane.f32.xlu2 %v689_v27  ;;  %v619_v32 = vmul.f32 %v1090_v29, %v617_v31  ;;  %v1092_v34 = vpop.eup %1091 }
 0x2eb   : > { %v620_v7 = vmul.f32 %v1092_v34, %v618_v35  ;;  %v1094_v8 = vpop.eup %1093 }
 0x2ec   : > { %v668_v12 = vmul.f32 %v1094_v8, %v666_v39  ;;  %v1096_v41 = vpop.eup %1095 }
 0x2ed   : > { %v669_v43 = vmul.f32 %v1096_v41, %v667_v42 }
 0x33d   : > { %v639_v30 = vpop.xlane.xlu2 %638 }
 0x33e   : > { %v643_v33 = vadd.f32 %v639_v30, %v619_v32 }
 0x340   : > { %646 = vst.msk [vmem:[#allocation3] sm:$0xff] %vm645_vm10, %v643_v33 }
 0x345   : > { %v642_v36 = vpop.xlane.xlu1 %641 }
 0x346   : > { %v644_v37 = vadd.f32 %v642_v36, %v620_v7 }
 0x348   : > { %647 = vst.msk [vmem:[#allocation3 + $0x8] sm:$0xff] %vm645_vm10, %v644_v37 }
 0x355   : > { %v688_v13 = vpop.xlane.xlu0 %687 }
 0x356   : > { %v692_v40 = vadd.f32 %v688_v13, %v668_v12 }
 0x358   : > { %694 = vst.msk [vmem:[#allocation5] sm:$0xff] %vm645_vm10, %v692_v40 }
 0x35c   : > { %701 = sbr.rel (%p937_p8) target bundleno = 886 (0x376), region = 60 }
 0x35d   : > { %v691_v44 = vpop.xlane.xlu2 %690 }
 0x35e   : > { %v693_v45 = vadd.f32 %v691_v44, %v669_v43 }
 0x360   : > { %695 = vst.msk [vmem:[#allocation5 + $0x8] sm:$0xff] %vm645_vm10, %v693_v45 }
 0x361   : > { %v706_v46 = vld [vmem:[#allocation3] sm:$0xff]  ;;  %v707_v48 = vld [vmem:[#allocation3 + $0x8] sm:$0xff]  ;;  %v704_v51 = vld [vmem:[#allocation2] sm:$0xff] }
 0x362   : > { %1097 = vlog2.f32 %v706_v46  ;;  %v720_v47 = vld [vmem:[#allocation5] sm:$0xff]  ;;  %v718_v54 = vld [vmem:[#allocation4] sm:$0xff]  ;;  %v705_v58 = vld [vmem:[#allocation2 + $0x8] sm:$0xff] }
 0x363   : > { %1099 = vlog2.f32 %v720_v47  ;;  %v702_v56 = vld [vmem:[#allocation6] sm:$0xff]  ;;  %v719_v62 = vld [vmem:[#allocation4 + $0x8] sm:$0xff] }
 0x364   : > { %1101 = vlog2.f32 %v707_v48  ;;  %v703_v3 = vld [vmem:[#allocation6 + $0x8] sm:$0xff] }
 0x367   : > { %v721_v49 = vld [vmem:[#allocation5 + $0x8] sm:$0xff] }
 0x368   : > { %1103 = vlog2.f32 %v721_v49  ;;  %v1098_v50 = vpop.eup %1097 }
 0x369   : > { %v1100_v52 = vpop.eup %1099  ;;  %v709_v53 = vmul.f32 0.6931472, %v1098_v50 }
 0x36a   : > { %v1102_v55 = vpop.eup %1101  ;;  %v723_v57 = vmul.f32 0.6931472, %v1100_v52 }
 0x36b   : > { %v712_v60 = vadd.f32 %v709_v53, %v704_v51  ;;  %v711_v61 = vmul.f32 0.6931472, %v1102_v55 }
 0x36c   : > { %v726_v63 = vadd.f32 %v723_v57, %v718_v54 }
 0x36d   : > { %v714_v5 = vsub.f32 %v712_v60, %v702_v56  ;;  %v713_v9 = vadd.f32 %v711_v61, %v705_v58 }
 0x36e   : > { %v1104_v59 = vpop.eup %1103  ;;  %v728_v10 = vsub.f32 %v726_v63, %v702_v56 }
 0x36f   : > { %v725_v4 = vmul.f32 0.6931472, %v1104_v59  ;;  %716 = vst.msk [vmem:[%s1590_s17] sm:$0xff] %vm645_vm10, %v714_v5  ;;  %v715_v14 = vsub.f32 %v713_v9, %v703_v3 }
 0x370   : > { %730 = vst.msk [vmem:[%s1595_s10] sm:$0xff] %vm645_vm10, %v728_v10 }
 0x371   : > { %v727_v11 = vadd.f32 %v725_v4, %v719_v62  ;;  %717 = vst.msk [vmem:[%s1590_s17 + $0x8] sm:$0xff] %vm645_vm10, %v715_v14 }
 0x373   : > { %v729_v15 = vsub.f32 %v727_v11, %v703_v3 }
 0x375   : > { %731 = vst.msk [vmem:[%s1595_s10 + $0x8] sm:$0xff] %vm645_vm10, %v729_v15 }
 0x376 PF: > { %s25_s28 = sadd.s32 1, %s1327_s28   ;;  %s1758_s6 = sld [smem:[#allocation22_spill]] }
 0x377   : > { %p22_p9 = scmp.ge.s32.totalorder %s25_s28, 6   ;;  %s1759_s25 = sld [smem:[#allocation19_spill]] }
 0x378   : > { %s1760_s11 = sld [smem:[#allocation20_spill]]  ;;  %s1762_s18 = smov %s1291_s19 }
 0x379   : > { %s1761_s27 = sld [smem:[#allocation21_spill]]  ;;  %s1763_s19 = smov %s1295_s20 }
 0x37a   : > { %s1765_s21 = smov %s1303_s22  ;;  %s1766_s22 = smov %s1307_s23 }
 0x37b   : > { %s1767_s23 = smov %s1512_s0  ;;  %s1768_s24 = smov %s1319_s26 }
 0x37c   : > { %s1764_s20 = smov %s1758_s6  ;;  %24 = sbr.rel (!%p22_p9) target bundleno = 15 (0xf), region = 133 }
 0x37e   : > { %s1769_s26 = smov %s1760_s11 }
 0x381   :  { %771 = vsyncpa [#allocation8], 1 }
 0x382   :  { %773 = vsyncpa [#allocation8 + $0x1], 1 }
 0x383   :  { %774 = vsyncpa [#allocation10], 1 }
 0x384   :  { %776 = vsyncpa [#allocation10 + $0x1], 1 }
 0x385   :  { %777 = vsyncpa [#allocation13], 1 }
 0x386   :  { %779 = vsyncpa [#allocation13 + $0x1], 1 }

</bundles_post_ra>
